<compile_context>
chip_gen: v6e
topology: v6e:2x2x1
jax: 0.10.0
libtpu: 0.0.40
codegen_flags: <defaults>
</compile_context>

<pallas_src>
import functools

import jax
import jax.numpy as jnp
import numpy as np
from jax.experimental import pallas as pl
from jax.experimental.pallas import tpu as pltpu

_LANE = 128
_SUBLANE = 8


def _round_up(x, m):
    return ((x + m - 1) // m) * m


def gaussian_policy_kernel(xy_ref, tab_ref, w2_ref, b2_ref, w3_ref, b3_ref,
                           lo_ref, hi_ref, out_ref, *, x_rows):
    xy = xy_ref[...]                          # (TB, 2) int32 packed [x, y] indices
    xi = xy[:, 0:1]
    yi = xy[:, 1:2] + x_rows                  # y rows live below the x rows in the stacked table
    tb, r = xy.shape[0], tab_ref.shape[0]

    # Two-hot gather: one MXU pass against the W1-folded, row-stacked table
    # produces layer-1 pre-activations (x_embed@W1 + b1 + y_embed@W1) directly.
    lane = jax.lax.broadcasted_iota(jnp.int32, (tb, r), 1)
    two_hot = ((lane == xi) | (lane == yi)).astype(jnp.float32)
    h = jnp.maximum(
        jnp.dot(two_hot, tab_ref[...], preferred_element_type=jnp.float32), 0.0)

    # Remaining MLP layers (128-lane padded, biases as resident (1, N) rows).
    h = jnp.maximum(
        jnp.dot(h, w2_ref[...], preferred_element_type=jnp.float32) + b2_ref[...], 0.0)
    out = jnp.dot(h, w3_ref[...], preferred_element_type=jnp.float32) + b3_ref[...]

    # Clamp only the log_std lanes via precomputed per-lane lo/hi rows
    # (+-inf everywhere else -> identity).  One lane-dense slab store.
    out_ref[...] = jnp.minimum(jnp.maximum(out, lo_ref[...]), hi_ref[...])


def _pad2d(a, rows, cols):
    a = jnp.asarray(a, jnp.float32)
    return jnp.pad(a, ((0, rows - a.shape[0]), (0, cols - a.shape[1])))


def prepare_policy_params(params, num_actions, log_std_min, log_std_max):
    """One-time param prep: fold Linear-1 into the embedding tables, stack them,
    pad lane dims to 128 (rows only to a sublane multiple), build clamp rows."""
    xt = jnp.asarray(params["x_pos_embedding"], jnp.float32)
    yt = jnp.asarray(params["y_pos_embedding"], jnp.float32)
    w1 = jnp.asarray(params["lin1_w"], jnp.float32)
    b1 = jnp.asarray(params["lin1_b"], jnp.float32)
    max_x, max_y = xt.shape[0], yt.shape[0]
    H1 = w1.shape[1]
    H2 = params["lin2_w"].shape[1]
    A2 = params["lin3_w"].shape[1]
    H1p, H2p, A2p = (_round_up(v, _LANE) for v in (H1, H2, A2))

    # feats@W1 + b1 = x_embed@W1 + b1 + y_embed@W1  -> fold b1 into the x half
    # (each two-hot row picks exactly one x row, so b1 is added exactly once).
    x_fold = xt @ w1 + b1                                    # (max_x, H1)
    y_fold = yt @ w1                                         # (max_y, H1)
    stacked = jnp.concatenate([x_fold, y_fold], axis=0)      # (max_x+max_y, H1)
    rows = _round_up(max_x + max_y, _SUBLANE)
    table = _pad2d(stacked, rows, H1p)

    num_actions = int(num_actions)
    lo = np.full((1, A2p), -np.inf, np.float32)
    hi = np.full((1, A2p), np.inf, np.float32)
    lo[0, num_actions:2 * num_actions] = float(log_std_min)
    hi[0, num_actions:2 * num_actions] = float(log_std_max)

    return {
        "num_actions": num_actions,
        "x_rows": int(max_x),
        "table": table,
        "w2": _pad2d(params["lin2_w"], H1p, H2p),
        "b2": _pad2d(params["lin2_b"], 1, H2p),
        "w3": _pad2d(params["lin3_w"], H2p, A2p),
        "b3": _pad2d(params["lin3_b"], 1, A2p),
        "lo": jnp.asarray(lo),
        "hi": jnp.asarray(hi),
    }


def gaussian_policy_forward(prepared, state):
    obs, stam, x, y = state
    del obs, stam  # conv output is dead code in the original forward; stamina embedding unused

    x = jnp.asarray(x, jnp.int32).reshape(-1)
    y = jnp.asarray(y, jnp.int32).reshape(-1)
    B = int(x.shape[0])
    num_actions = prepared["num_actions"]

    table = prepared["table"]
    w2, b2 = prepared["w2"], prepared["b2"]
    w3, b3 = prepared["w3"], prepared["b3"]
    lo, hi = prepared["lo"], prepared["hi"]
    A2p = w3.shape[1]

    # Batch tiling: large tiles (cap 1024) amortize the ~0.35us/step grid
    # overhead, but keep >=2 grid steps when the batch allows so megacore
    # (v7x) can shard the "parallel" batch axis across both TensorCores.
    Bp0 = _round_up(max(B, 1), _SUBLANE)
    if Bp0 > _SUBLANE:
        TB = min(1024, _round_up(pl.cdiv(Bp0, 2), _SUBLANE))
    else:
        TB = Bp0
    Bp = _round_up(Bp0, TB)

    # Pack x and y into one (Bp, 2) block (single per-step input DMA).
    xy = jnp.stack([jnp.pad(x, (0, Bp - B)), jnp.pad(y, (0, Bp - B))], axis=1)

    kernel = functools.partial(gaussian_policy_kernel, x_rows=prepared["x_rows"])

    def _resident(arr):
        # Full-array block with a constant index_map -> VMEM-resident across
        # all grid steps (no per-step re-DMA).
        return pl.BlockSpec(arr.shape, lambda i: (0, 0))

    out = pl.pallas_call(
        kernel,
        grid=(Bp // TB,),
        in_specs=[
            pl.BlockSpec((TB, 2), lambda i: (i, 0)),          # packed [x, y] indices
            _resident(table), _resident(w2), _resident(b2),
            _resident(w3), _resident(b3), _resident(lo), _resident(hi),
        ],
        out_specs=pl.BlockSpec((TB, A2p), lambda i: (i, 0)),
        out_shape=jax.ShapeDtypeStruct((Bp, A2p), jnp.float32),
        compiler_params=pltpu.CompilerParams(dimension_semantics=("parallel",)),
    )(xy, table, w2, b2, w3, b3, lo, hi)

    # Chunk at the LOGICAL num_actions (not the padded width).
    mean = out[:B, :num_actions]
    log_std = out[:B, num_actions:2 * num_actions]
    return mean, log_std


def init_params(key, config):
    """Deterministic parameter init mirroring the module's __init__ shapes."""
    D = config["out_channels"]
    H1, H2 = config["hidden_dims"]
    A2 = config["num_actions"] * 2
    keys = jax.random.split(key, 9)

    def linear(kw, kb, fan_in, fan_out):
        bound = 1.0 / np.sqrt(fan_in)
        w = jax.random.uniform(kw, (fan_in, fan_out), jnp.float32, -bound, bound)
        b = jax.random.uniform(kb, (1, fan_out), jnp.float32, -bound, bound)
        return w, b

    w1, b1 = linear(keys[0], keys[1], D, H1)
    w2, b2 = linear(keys[2], keys[3], H1, H2)
    w3, b3 = linear(keys[4], keys[5], H2, A2)
    return {
        "x_pos_embedding": jax.random.normal(keys[6], (config["max_x"], D), jnp.float32),
        "y_pos_embedding": jax.random.normal(keys[7], (config["max_y"], D), jnp.float32),
        "stamina_embedding": jax.random.normal(keys[8], (config["max_stamina"], D), jnp.float32),
        "lin1_w": w1, "lin1_b": b1,
        "lin2_w": w2, "lin2_b": b2,
        "lin3_w": w3, "lin3_b": b3,
    }


def reference_forward(params, state, *, log_std_min, log_std_max):
    """Pure-JAX reference of the same forward for a correctness check."""
    _, _, x, y = state
    xe = jnp.take(params["x_pos_embedding"], jnp.asarray(x, jnp.int32), axis=0)
    ye = jnp.take(params["y_pos_embedding"], jnp.asarray(y, jnp.int32), axis=0)
    h = xe + ye
    h = jnp.maximum(h @ params["lin1_w"] + params["lin1_b"], 0.0)
    h = jnp.maximum(h @ params["lin2_w"] + params["lin2_b"], 0.0)
    out = h @ params["lin3_w"] + params["lin3_b"]
    a = out.shape[-1] // 2
    return out[:, :a], jnp.clip(out[:, a:], log_std_min, log_std_max)


if __name__ == "__main__":
    config = {
        "device": None,
        "log_std_min": -20.0,
        "log_std_max": 2.0,
        "epsilon": 1e-6,
        "in_channels": 4,
        "out_channels": 32,
        "hidden_channels": 16,
        "num_actions": 8,
        "hidden_dims": [32, 32],
        "max_stamina": 16,
        "max_x": 16,
        "max_y": 16,
    }

    key = jax.random.PRNGKey(0)
    k_params, k_obs, k_stam, k_x, k_y = jax.random.split(key, 5)
    params = init_params(k_params, config)
    prepared = prepare_policy_params(
        params, config["num_actions"],
        config["log_std_min"], config["log_std_max"])

    B = 2
    obs = jax.random.normal(k_obs, (B, config["in_channels"], 16, 16), jnp.float32)  # NCHW
    stam = jax.random.randint(k_stam, (B,), 0, config["max_stamina"], jnp.int32)
    x = jax.random.randint(k_x, (B,), 0, config["max_x"], jnp.int32)
    y = jax.random.randint(k_y, (B,), 0, config["max_y"], jnp.int32)

    mean, log_std = gaussian_policy_forward(prepared, (obs, stam, x, y))
    jax.block_until_ready((mean, log_std))

    ref_mean, ref_log_std = reference_forward(
        params, (obs, stam, x, y),
        log_std_min=config["log_std_min"], log_std_max=config["log_std_max"])
    np.testing.assert_allclose(np.asarray(mean), np.asarray(ref_mean), rtol=1e-5, atol=1e-5)
    np.testing.assert_allclose(np.asarray(log_std), np.asarray(ref_log_std), rtol=1e-5, atol=1e-5)

    print("KERNEL_OK")
</pallas_src>

<mosaic_0001>
module attributes {stable_mosaic.version = 11 : i64} {
  func.func @gaussian_policy_kernel(%arg0: i32, %arg1: memref<8x2xi32, #tpu.memory_space<vmem>>, %arg2: memref<32x128xf32, #tpu.memory_space<vmem>>, %arg3: memref<128x128xf32, #tpu.memory_space<vmem>>, %arg4: memref<1x128xf32, #tpu.memory_space<vmem>>, %arg5: memref<128x128xf32, #tpu.memory_space<vmem>>, %arg6: memref<1x128xf32, #tpu.memory_space<vmem>>, %arg7: memref<1x128xf32, #tpu.memory_space<vmem>>, %arg8: memref<1x128xf32, #tpu.memory_space<vmem>>, %arg9: memref<8x128xf32, #tpu.memory_space<vmem>>) attributes {dimension_semantics = [#tpu.dimension_semantics<parallel>], iteration_bounds = array<i64: 1>, scalar_prefetch = 0 : i64, scratch_operands = 0 : i64, tpu.core_type = #tpu.core_type<tc>, window_params = [{transform_indices = @transform_0, window_bounds = array<i64: 8, 2>}, {pipeline_mode = #tpu.pipeline_mode<synchronous>, transform_indices = @transform_1, window_bounds = array<i64: 32, 128>}, {pipeline_mode = #tpu.pipeline_mode<synchronous>, transform_indices = @transform_2, window_bounds = array<i64: 128, 128>}, {pipeline_mode = #tpu.pipeline_mode<synchronous>, transform_indices = @transform_3, window_bounds = array<i64: 1, 128>}, {pipeline_mode = #tpu.pipeline_mode<synchronous>, transform_indices = @transform_4, window_bounds = array<i64: 128, 128>}, {pipeline_mode = #tpu.pipeline_mode<synchronous>, transform_indices = @transform_5, window_bounds = array<i64: 1, 128>}, {pipeline_mode = #tpu.pipeline_mode<synchronous>, transform_indices = @transform_6, window_bounds = array<i64: 1, 128>}, {pipeline_mode = #tpu.pipeline_mode<synchronous>, transform_indices = @transform_7, window_bounds = array<i64: 1, 128>}, {transform_indices = @transform_8, window_bounds = array<i64: 8, 128>}]} {
    %c0 = arith.constant 0 : index
    %c0_0 = arith.constant 0 : index
    %0 = vector.load %arg1[%c0, %c0_0] : memref<8x2xi32, #tpu.memory_space<vmem>>, vector<8x2xi32>
    %1 = vector.extract_strided_slice %0 {offsets = [0, 0], sizes = [8, 1], strides = [1, 1]} : vector<8x2xi32> to vector<8x1xi32>
    %2 = vector.extract_strided_slice %0 {offsets = [0, 1], sizes = [8, 1], strides = [1, 1]} : vector<8x2xi32> to vector<8x1xi32>
    %c16_i32 = arith.constant 16 : i32
    %3 = vector.broadcast %c16_i32 : i32 to vector<8x1xi32>
    %4 = arith.addi %2, %3 : vector<8x1xi32>
    %5 = tpu.iota {dimensions = array<i32: 1>} : vector<8x32xi32>
    %6 = vector.broadcast %1 : vector<8x1xi32> to vector<8x32xi32>
    %7 = arith.cmpi eq, %5, %6 : vector<8x32xi32>
    %8 = vector.broadcast %4 : vector<8x1xi32> to vector<8x32xi32>
    %9 = arith.cmpi eq, %5, %8 : vector<8x32xi32>
    %10 = arith.ori %7, %9 : vector<8x32xi1>
    %11 = arith.extui %10 : vector<8x32xi1> to vector<8x32xi32>
    %12 = arith.sitofp %11 : vector<8x32xi32> to vector<8x32xf32>
    %c0_1 = arith.constant 0 : index
    %c0_2 = arith.constant 0 : index
    %13 = vector.load %arg2[%c0_1, %c0_2] : memref<32x128xf32, #tpu.memory_space<vmem>>, vector<32x128xf32>
    %cst = arith.constant dense<0.000000e+00> : vector<8x128xf32>
    %14 = tpu.matmul %12, %13, %cst {dimension_numbers = #tpu.dot_dimension_numbers<[1], [0], [0], [1], [0, 0, 1, 1], [], []>} : vector<8x32xf32>, vector<32x128xf32>, vector<8x128xf32> -> vector<8x128xf32>
    %cst_3 = arith.constant 0.000000e+00 : f32
    %15 = vector.broadcast %cst_3 : f32 to vector<8x128xf32>
    %16 = arith.maximumf %14, %15 : vector<8x128xf32>
    %c0_4 = arith.constant 0 : index
    %c0_5 = arith.constant 0 : index
    %17 = vector.load %arg3[%c0_4, %c0_5] : memref<128x128xf32, #tpu.memory_space<vmem>>, vector<128x128xf32>
    %cst_6 = arith.constant dense<0.000000e+00> : vector<8x128xf32>
    %18 = tpu.matmul %16, %17, %cst_6 {dimension_numbers = #tpu.dot_dimension_numbers<[1], [0], [0], [1], [0, 0, 1, 1], [], []>} : vector<8x128xf32>, vector<128x128xf32>, vector<8x128xf32> -> vector<8x128xf32>
    %c0_7 = arith.constant 0 : index
    %c0_8 = arith.constant 0 : index
    %19 = vector.load %arg4[%c0_7, %c0_8] : memref<1x128xf32, #tpu.memory_space<vmem>>, vector<1x128xf32>
    %20 = vector.broadcast %19 : vector<1x128xf32> to vector<8x128xf32>
    %21 = arith.addf %18, %20 : vector<8x128xf32>
    %cst_9 = arith.constant 0.000000e+00 : f32
    %22 = vector.broadcast %cst_9 : f32 to vector<8x128xf32>
    %23 = arith.maximumf %21, %22 : vector<8x128xf32>
    %c0_10 = arith.constant 0 : index
    %c0_11 = arith.constant 0 : index
    %24 = vector.load %arg5[%c0_10, %c0_11] : memref<128x128xf32, #tpu.memory_space<vmem>>, vector<128x128xf32>
    %cst_12 = arith.constant dense<0.000000e+00> : vector<8x128xf32>
    %25 = tpu.matmul %23, %24, %cst_12 {dimension_numbers = #tpu.dot_dimension_numbers<[1], [0], [0], [1], [0, 0, 1, 1], [], []>} : vector<8x128xf32>, vector<128x128xf32>, vector<8x128xf32> -> vector<8x128xf32>
    %c0_13 = arith.constant 0 : index
    %c0_14 = arith.constant 0 : index
    %26 = vector.load %arg6[%c0_13, %c0_14] : memref<1x128xf32, #tpu.memory_space<vmem>>, vector<1x128xf32>
    %27 = vector.broadcast %26 : vector<1x128xf32> to vector<8x128xf32>
    %28 = arith.addf %25, %27 : vector<8x128xf32>
    %c0_15 = arith.constant 0 : index
    %c0_16 = arith.constant 0 : index
    %29 = vector.load %arg7[%c0_15, %c0_16] : memref<1x128xf32, #tpu.memory_space<vmem>>, vector<1x128xf32>
    %30 = vector.broadcast %29 : vector<1x128xf32> to vector<8x128xf32>
    %31 = arith.maximumf %28, %30 : vector<8x128xf32>
    %c0_17 = arith.constant 0 : index
    %c0_18 = arith.constant 0 : index
    %32 = vector.load %arg8[%c0_17, %c0_18] : memref<1x128xf32, #tpu.memory_space<vmem>>, vector<1x128xf32>
    %33 = vector.broadcast %32 : vector<1x128xf32> to vector<8x128xf32>
    %34 = arith.minimumf %31, %33 : vector<8x128xf32>
    %c0_19 = arith.constant 0 : index
    %c0_20 = arith.constant 0 : index
    %35 = vector.load %arg9[%c0_19, %c0_20] : memref<8x128xf32, #tpu.memory_space<vmem>>, vector<8x128xf32>
    tpu.vector_store %arg9[%c0_19, %c0_20], %34 {strides = array<i32>} : memref<8x128xf32, #tpu.memory_space<vmem>>, vector<8x128xf32>,
    return
  }
  func.func @transform_0(%arg0: i32) -> (i32, i32) {
    %c0_i32 = arith.constant 0 : i32
    %c0_i32_0 = arith.constant 0 : i32
    return %arg0, %c0_i32 : i32, i32
  }
  func.func @transform_1(%arg0: i32) -> (i32, i32) {
    %c0_i32 = arith.constant 0 : i32
    %c0_i32_0 = arith.constant 0 : i32
    %c0_i32_1 = arith.constant 0 : i32
    return %c0_i32, %c0_i32_0 : i32, i32
  }
  func.func @transform_2(%arg0: i32) -> (i32, i32) {
    %c0_i32 = arith.constant 0 : i32
    %c0_i32_0 = arith.constant 0 : i32
    %c0_i32_1 = arith.constant 0 : i32
    return %c0_i32, %c0_i32_0 : i32, i32
  }
  func.func @transform_3(%arg0: i32) -> (i32, i32) {
    %c0_i32 = arith.constant 0 : i32
    %c0_i32_0 = arith.constant 0 : i32
    %c0_i32_1 = arith.constant 0 : i32
    return %c0_i32, %c0_i32_0 : i32, i32
  }
  func.func @transform_4(%arg0: i32) -> (i32, i32) {
    %c0_i32 = arith.constant 0 : i32
    %c0_i32_0 = arith.constant 0 : i32
    %c0_i32_1 = arith.constant 0 : i32
    return %c0_i32, %c0_i32_0 : i32, i32
  }
  func.func @transform_5(%arg0: i32) -> (i32, i32) {
    %c0_i32 = arith.constant 0 : i32
    %c0_i32_0 = arith.constant 0 : i32
    %c0_i32_1 = arith.constant 0 : i32
    return %c0_i32, %c0_i32_0 : i32, i32
  }
  func.func @transform_6(%arg0: i32) -> (i32, i32) {
    %c0_i32 = arith.constant 0 : i32
    %c0_i32_0 = arith.constant 0 : i32
    %c0_i32_1 = arith.constant 0 : i32
    return %c0_i32, %c0_i32_0 : i32, i32
  }
  func.func @transform_7(%arg0: i32) -> (i32, i32) {
    %c0_i32 = arith.constant 0 : i32
    %c0_i32_0 = arith.constant 0 : i32
    %c0_i32_1 = arith.constant 0 : i32
    return %c0_i32, %c0_i32_0 : i32, i32
  }
  func.func @transform_8(%arg0: i32) -> (i32, i32) {
    %c0_i32 = arith.constant 0 : i32
    %c0_i32_0 = arith.constant 0 : i32
    return %arg0, %c0_i32 : i32, i32
  }
}

</mosaic_0001>

<bundles_post_ra>
// kernel: tpu_custom_call.1
= control target key start
LH: loop header
LB: loop body
LE: loop exit
PB: predicated region body
PF: predicated region fallthrough
CT: control target
= control target key end

     0   :  { %13 = vsyncpa [#allocation3], 0  ;;  %s734_s0 = inlined_call_operand.vmem [shape: s32[8,2], index: 0, kind: input, shape index: {}]   ;;  %s735_s1 = inlined_call_operand.hbm [shape: f32[32,128], index: 1, kind: input, shape index: {}]   ;;  %s736_s2 = inlined_call_operand.hbm [shape: f32[128,128], index: 2, kind: input, shape index: {}]   ;;  %s737_s3 = inlined_call_operand.vmem [shape: f32[1,128], index: 3, kind: input, shape index: {}]   ;;  %s738_s4 = inlined_call_operand.hbm [shape: f32[128,128], index: 4, kind: input, shape index: {}]   ;;  %s739_s5 = inlined_call_operand.vmem [shape: f32[1,128], index: 5, kind: input, shape index: {}]   ;;  %s740_s6 = inlined_call_operand.vmem [shape: f32[1,128], index: 6, kind: input, shape index: {}]   ;;  %s741_s7 = inlined_call_operand.vmem [shape: f32[1,128], index: 7, kind: input, shape index: {}]   ;;  %s742_s8 = inlined_call_operand.hbm [shape: f32[8,128], index: 8, kind: output, shape index: {}]  }
   0x1   :  { %14 = vsyncpa [#allocation6], 0 }
   0x2   :  { %15 = vsyncpa [#allocation4], 0  ;;  %s609_s27 = smov [#allocation5]   ;;  %s610_s29 = smov [#allocation2]  }
   0x3   :  { %s35_s28 = sshll.u32 %s609_s27, 4  ;;  %s23_s30 = sshll.u32 %s610_s29, 4  ;;  %s36_s28 = int_to_ptr.vmem [resolvable:$true] %s35_s28  ;;  %s24_s30 = int_to_ptr.vmem [resolvable:$true] %s23_s30 }
   0x4   :  { %s531_s9 = scalar_lea.vmem %s36_s28, 2048  ;;  %p536_p1 = scmp.lt.s32.totalorder %s36_s28, %s36_s28 }
   0x5   :  { %p532_p0 = scmp.ne.s32.totalorder %s36_s28, %s531_s9  ;;  %p537_p2 = scmp.lt.s32.totalorder %s531_s9, %s531_s9 }
   0x7   :  { %p538_p3 = por %p537_p2, %p536_p1 }
   0x9   :  { %p539_p4 = pnand %p538_p3, %p532_p0 }
   0xb   :  { %542 = shalt.err (!%p539_p4)
}
   0xc   :  { %s611_s10 = smov 128   ;;  %s612_s11 = smov 8  }
   0xd   :  { %41 = dma.hbm_to_vmem [thread:$0]  %s736_s2, 2048, %s36_s28, [#allocation6], %s611_s10, %s611_s10, %s612_s11  }
   0xe   :  { %s551_s14 = scalar_lea.vmem %s24_s30, 512  ;;  %p556_p6 = scmp.lt.s32.totalorder %s24_s30, %s24_s30 }
   0xf   :  { %p552_p5 = scmp.ne.s32.totalorder %s24_s30, %s551_s14  ;;  %p557_p7 = scmp.lt.s32.totalorder %s551_s14, %s551_s14 }
  0x11   :  { %p558_p8 = por %p557_p7, %p556_p6 }
  0x13   :  { %p559_p9 = pnand %p558_p8, %p552_p5 }
  0x15   :  { %562 = shalt.err (!%p559_p9)
}
  0x16   :  { %29 = dma.hbm_to_vmem [thread:$0]  %s735_s1, 512, %s24_s30, [#allocation3], %s611_s10, %s611_s10, %s612_s11  }
  0x17   :  { %s613_s17 = smov [#allocation7]  }
  0x18   :  { %s49_s18 = sshll.u32 %s613_s17, 4  ;;  %s50_s18 = int_to_ptr.vmem [resolvable:$true] %s49_s18 }
  0x19   :  { %s571_s19 = scalar_lea.vmem %s50_s18, 2048  ;;  %p576_p11 = scmp.lt.s32.totalorder %s50_s18, %s50_s18 }
  0x1a   :  { %p572_p10 = scmp.ne.s32.totalorder %s50_s18, %s571_s19  ;;  %p577_p12 = scmp.lt.s32.totalorder %s571_s19, %s571_s19 }
  0x1c   :  { %p578_p13 = por %p577_p12, %p576_p11 }
  0x1e   :  { %p579_p0 = pnand %p578_p13, %p572_p10 }
  0x20   :  { %582 = shalt.err (!%p579_p0)
}
  0x21   :  { %55 = dma.hbm_to_vmem [thread:$0]  %s738_s4, 2048, %s50_s18, [#allocation6], %s611_s10, %s611_s10, %s612_s11  }
  0x22   :  { %603 = dma.done.wait [#allocation3], 512  }
  0x23   :  { %604 = vsyncadd [#allocation3], 4294966784 }
  0x24   :  { %605 = dma.done.wait [#allocation6], 4096  }
  0x25   :  { %606 = vsyncadd [#allocation6], 4294963200  ;;  %v614_v0 = vmov 0   ;;  %v615_v1 = vmov 0.0   ;;  %v71_v2 = vld [vmem:[%s734_s0] sm:$0xff]  ;;  %v89_v3 = vld [vmem:[#allocation2 + $0x18] sm:$0xff]  ;;  %v73_v23 = vlaneseq }
  0x26   :  { %521 = vset.pattern.permute.xlu0 %v614_v0  ;;  %430 = vmatprep.subr.mxu0 %v615_v1  ;;  %v88_v4 = vld [vmem:[#allocation2 + $0x10] sm:$0xff]  ;;  %v72_v5 = vadd.s32 16, %v71_v2  ;;  %v87_v6 = vld [vmem:[#allocation2 + $0x8] sm:$0xff]  ;;  %v86_v7 = vld [vmem:[#allocation2] sm:$0xff]  ;;  %vm616_vm0 = vmmov 0   ;;  %v617_v8 = vmov 1  }
  0x27   :  { %441 = vmatprep.subr.mxu1 %v615_v1  ;;  %76 = vperm.xlu0 %521, %v71_v2   ;;  %v180_v9 = vld [vmem:[#allocation5 + $0x78] sm:$0xff]  ;;  %v179_v10 = vld [vmem:[#allocation5 + $0x70] sm:$0xff]  ;;  %v178_v11 = vld [vmem:[#allocation5 + $0x68] sm:$0xff]  ;;  %v74_v25 = vand.u32 127, %v73_v23  ;;  %vm90_vm3 = vcmask 261120  }
  0x28   :  { %431 = vmatpush3.msra.mxu0 %v89_v3  ;;  %438 = vmatprep.mubr.msk.f32.mxu0 %vm616_vm0, %v615_v1  ;;  %v177_v12 = vld [vmem:[#allocation5 + $0x60] sm:$0xff]  ;;  %v176_v13 = vld [vmem:[#allocation5 + $0x58] sm:$0xff]  ;;  %v175_v14 = vld [vmem:[#allocation5 + $0x50] sm:$0xff] }
  0x29   :  { %432 = vmatprep.subr.mxu0 %v615_v1  ;;  %442 = vmatpush3.msra.mxu1 %v180_v9  ;;  %v174_v15 = vld [vmem:[#allocation5 + $0x48] sm:$0xff]  ;;  %v173_v16 = vld [vmem:[#allocation5 + $0x40] sm:$0xff]  ;;  %v172_v17 = vld [vmem:[#allocation5 + $0x38] sm:$0xff] }
  0x2a   :  { %433 = vmatpush3.msra.mxu0 %v88_v4  ;;  %443 = vmatprep.subr.mxu1 %v615_v1  ;;  %v171_v18 = vld [vmem:[#allocation5 + $0x30] sm:$0xff]  ;;  %v170_v19 = vld [vmem:[#allocation5 + $0x28] sm:$0xff]  ;;  %v169_v20 = vld [vmem:[#allocation5 + $0x20] sm:$0xff] }
  0x2b   :  { %434 = vmatprep.subr.mxu0 %v615_v1  ;;  %522 = vset.pattern.permute.xlu0 %v617_v8  ;;  %v168_v21 = vld [vmem:[#allocation5 + $0x18] sm:$0xff]  ;;  %v167_v22 = vld [vmem:[#allocation5 + $0x10] sm:$0xff]  ;;  %v166_v28 = vld [vmem:[#allocation5 + $0x8] sm:$0xff] }
  0x2c   :  { %435 = vmatpush3.msra.mxu0 %v87_v6  ;;  %80 = vperm.xlu0 %522, %v72_v5   ;;  %v165_v29 = vld [vmem:[#allocation5] sm:$0xff]  ;;  %v274_v30 = vld [vmem:[#allocation7 + $0x78] sm:$0xff]  ;;  %v273_v31 = vld [vmem:[#allocation7 + $0x70] sm:$0xff] }
  0x2d   :  { %436 = vmatprep.subr.mxu0 %v615_v1  ;;  %473 = vmatprep.mubr.msk.f32.mxu1 %vm616_vm0, %v615_v1  ;;  %v272_v32 = vld [vmem:[#allocation7 + $0x68] sm:$0xff]  ;;  %v271_v33 = vld [vmem:[#allocation7 + $0x60] sm:$0xff]  ;;  %v270_v34 = vld [vmem:[#allocation7 + $0x58] sm:$0xff] }
  0x2e   :  { %437 = vmatpush3.msra.mxu0 %v86_v7  ;;  %444 = vmatpush3.msra.mxu1 %v179_v10  ;;  %v269_v35 = vld [vmem:[#allocation7 + $0x50] sm:$0xff]  ;;  %v268_v36 = vld [vmem:[#allocation7 + $0x48] sm:$0xff]  ;;  %v267_v37 = vld [vmem:[#allocation7 + $0x40] sm:$0xff] }
  0x2f   :  { %476 = vmatprep.subr.mxu0 %v615_v1  ;;  %445 = vmatprep.subr.mxu1 %v615_v1  ;;  %v266_v38 = vld [vmem:[#allocation7 + $0x38] sm:$0xff]  ;;  %v265_v39 = vld [vmem:[#allocation7 + $0x30] sm:$0xff]  ;;  %v264_v40 = vld [vmem:[#allocation7 + $0x28] sm:$0xff] }
  0x30   :  { %446 = vmatpush3.msra.mxu1 %v178_v11  ;;  %v263_v41 = vld [vmem:[#allocation7 + $0x20] sm:$0xff]  ;;  %v262_v42 = vld [vmem:[#allocation7 + $0x18] sm:$0xff]  ;;  %v261_v46 = vld [vmem:[#allocation7 + $0x10] sm:$0xff] }
  0x31   :  { %447 = vmatprep.subr.mxu1 %v615_v1  ;;  %v260_v47 = vld [vmem:[#allocation7 + $0x8] sm:$0xff]  ;;  %v259_v48 = vld [vmem:[#allocation7] sm:$0xff] }
  0x32   :  { %448 = vmatpush3.msra.mxu1 %v177_v12  ;;  %v387_v49 = vld [vmem:[%s737_s3] ss:$0 sm:$0xff]  ;;  %s618_s3 = smov [#allocation8]  }
  0x33   :  { %449 = vmatprep.subr.mxu1 %v615_v1  ;;  %v388_v54 = vld [vmem:[%s739_s5] ss:$0 sm:$0xff]  ;;  %s375_s28 = sshll.u32 %s618_s3, 4  ;;  %s376_s28 = int_to_ptr.vmem [resolvable:$true] %s375_s28 }
  0x34   :  { %450 = vmatpush3.msra.mxu1 %v176_v13  ;;  %v389_v56 = vld [vmem:[%s740_s6] ss:$0 sm:$0xff]  ;;  %s583_s29 = scalar_lea.vmem %s376_s28, 128  ;;  %p588_p2 = scmp.lt.s32.totalorder %s376_s28, %s376_s28 }
  0x35   :  { %451 = vmatprep.subr.mxu1 %v615_v1  ;;  %v390_v59 = vld [vmem:[%s741_s7] ss:$0 sm:$0xff]  ;;  %p584_p1 = scmp.ne.s32.totalorder %s376_s28, %s583_s29  ;;  %p589_p3 = scmp.lt.s32.totalorder %s583_s29, %s583_s29 }
  0x36   :  { %452 = vmatpush3.msra.mxu1 %v175_v14 }
  0x37   :  { %453 = vmatprep.subr.mxu1 %v615_v1  ;;  %p590_p4 = por %p589_p3, %p588_p2 }
  0x38   :  { %454 = vmatpush3.msra.mxu1 %v174_v15 }
  0x39   :  { %455 = vmatprep.subr.mxu1 %v615_v1  ;;  %p591_p5 = pnand %p590_p4, %p584_p1 }
  0x3a   :  { %456 = vmatpush3.msra.mxu1 %v173_v16 }
  0x3b   :  { %457 = vmatprep.subr.mxu1 %v615_v1 }
  0x3c   :  { %458 = vmatpush3.msra.mxu1 %v172_v17 }
  0x3d   :  { %459 = vmatprep.subr.mxu1 %v615_v1 }
  0x3e   :  { %460 = vmatpush3.msra.mxu1 %v171_v18 }
  0x3f   :  { %461 = vmatprep.subr.mxu1 %v615_v1 }
  0x40   :  { %462 = vmatpush3.msra.mxu1 %v170_v19 }
  0x41   :  { %463 = vmatprep.subr.mxu1 %v615_v1 }
  0x42   :  { %464 = vmatpush3.msra.mxu1 %v169_v20 }
  0x43   :  { %465 = vmatprep.subr.mxu1 %v615_v1 }
  0x44   :  { %466 = vmatpush3.msra.mxu1 %v168_v21 }
  0x45   :  { %467 = vmatprep.subr.mxu1 %v615_v1 }
  0x46   :  { %468 = vmatpush3.msra.mxu1 %v167_v22 }
  0x47   :  { %469 = vmatprep.subr.mxu1 %v615_v1 }
  0x48   :  { %470 = vmatpush3.msra.mxu1 %v166_v28 }
  0x49   :  { %471 = vmatprep.subr.mxu1 %v615_v1 }
  0x4a   :  { %472 = vmatpush3.msra.mxu1 %v165_v29 }
  0xa2   :  { %v77_v24 = vpop.permute.xlu0 %76 }
  0xa3   :  { %vm78_vm1 = vcmp.eq.s32.totalorder %v74_v25, %v77_v24 }
  0xa7   :  { %v81_v26 = vpop.permute.xlu0 %80 }
  0xa8   :  { %vm82_vm2 = vcmp.eq.s32.totalorder %v74_v25, %v81_v26 }
  0xa9   :  { %vm83_vm4 = vmor %vm78_vm1, %vm82_vm2 }
  0xaa   :  { %v385_v27 = vsel %vm83_vm4, 1.0, %v615_v1 }
  0xab   :  { %439 = vmatmul.mubr.msk.f32.vlgmr.msra.gmra.mxu0 %vm90_vm3, %v385_v27 }
  0xac   :  { %508 = vmatprep.mubr.msk.f32.mxu0 %vm616_vm0, %v615_v1  ;;  %477 = vmatpush3.msra.mxu0 %v274_v30 }
  0xad   :  { %478 = vmatprep.subr.mxu0 %v615_v1 }
  0xae   :  { %479 = vmatpush3.msra.mxu0 %v273_v31 }
  0xaf   :  { %480 = vmatprep.subr.mxu0 %v615_v1 }
  0xb0   :  { %481 = vmatpush3.msra.mxu0 %v272_v32 }
  0xb1   :  { %482 = vmatprep.subr.mxu0 %v615_v1 }
  0xb2   :  { %483 = vmatpush3.msra.mxu0 %v271_v33 }
  0xb3   :  { %484 = vmatprep.subr.mxu0 %v615_v1 }
  0xb4   :  { %485 = vmatpush3.msra.mxu0 %v270_v34 }
  0xb5   :  { %486 = vmatprep.subr.mxu0 %v615_v1 }
  0xb6   :  { %487 = vmatpush3.msra.mxu0 %v269_v35 }
  0xb7   :  { %488 = vmatprep.subr.mxu0 %v615_v1 }
  0xb8   :  { %489 = vmatpush3.msra.mxu0 %v268_v36 }
  0xb9   :  { %490 = vmatprep.subr.mxu0 %v615_v1 }
  0xba   :  { %491 = vmatpush3.msra.mxu0 %v267_v37 }
  0xbb   :  { %492 = vmatprep.subr.mxu0 %v615_v1 }
  0xbc   :  { %493 = vmatpush3.msra.mxu0 %v266_v38 }
  0xbd   :  { %494 = vmatprep.subr.mxu0 %v615_v1 }
  0xbe   :  { %495 = vmatpush3.msra.mxu0 %v265_v39 }
  0xbf   :  { %496 = vmatprep.subr.mxu0 %v615_v1 }
  0xc0   :  { %497 = vmatpush3.msra.mxu0 %v264_v40 }
  0xc1   :  { %498 = vmatprep.subr.mxu0 %v615_v1 }
  0xc2   :  { %499 = vmatpush3.msra.mxu0 %v263_v41 }
  0xc3   :  { %500 = vmatprep.subr.mxu0 %v615_v1 }
  0xc4   :  { %501 = vmatpush3.msra.mxu0 %v262_v42 }
  0xc5   :  { %502 = vmatprep.subr.mxu0 %v615_v1 }
  0xc6   :  { %503 = vmatpush3.msra.mxu0 %v261_v46 }
  0xc7   :  { %504 = vmatprep.subr.mxu0 %v615_v1 }
  0xc8   :  { %505 = vmatpush3.msra.mxu0 %v260_v47 }
  0xc9   :  { %506 = vmatprep.subr.mxu0 %v615_v1 }
  0xca   :  { %507 = vmatpush3.msra.mxu0 %v259_v48 }
 0x16b   :  { %v160_v43 = vpop.f32.mrf.mxu0 }
 0x16c   :  { %v164_v44 = vmax.f32 %v160_v43, 0.0 }
 0x16d   :  { %v440_v45 = vpop.f32.mrf.mxu0 }
 0x16e   :  { %474 = vmatmul.mubr.f32.vlgmr.msra.gmra.mxu1 %v164_v44 }
 0x22e   :  { %v254_v50 = vpop.f32.mrf.mxu1 }
 0x22f   :  { %v255_v51 = vadd.f32 %v387_v49, %v254_v50 }
 0x230   :  { %v475_v52 = vpop.f32.mrf.mxu1 }
 0x231   :  { %v258_v53 = vmax.f32 %v255_v51, 0.0 }
 0x233   :  { %509 = vmatmul.mubr.f32.vlgmr.msra.gmra.mxu0 %v258_v53 }
 0x2f3   :  { %v348_v55 = vpop.f32.mrf.mxu0 }
 0x2f4   :  { %v349_v57 = vadd.f32 %v388_v54, %v348_v55 }
 0x2f5   :  { %v510_v58 = vpop.f32.mrf.mxu0 }
 0x2f6   :  { %v359_v60 = vmax.f32 %v349_v57, %v389_v56 }
 0x2f8   :  { %v367_v61 = vmin.f32 %v359_v60, %v390_v59 }
 0x2fa   :  { %368 = vst [vmem:[#allocation8] sm:$0xff] %v367_v61 }
 0x2fb   :  { %594 = shalt.err (!%p591_p5)
}
 0x2fc   :  { %378 = dma.vmem_to_hbm [thread:$0]  %s376_s28, 128, %s742_s8, [#allocation4]  }
 0x2fd   :  { %607 = dma.done.wait [#allocation4], 128  }
 0x2fe   :  { %608 = vsyncadd [#allocation4], 4294967168 }
 0x2ff   :  { %382 = vsyncpa [#allocation3], 1 }
 0x300   :  { %383 = vsyncpa [#allocation6], 1 }
 0x301   :  { %384 = vsyncpa [#allocation4], 1 }

</bundles_post_ra>
